<compile_context>
chip_gen: v6e
topology: v6e:2x2x1
jax: 0.10.0
libtpu: 0.0.40
codegen_flags: <defaults>
</compile_context>

<pallas_src>
import jax
import jax.numpy as jnp
from jax.experimental import pallas as pl
from jax.experimental.pallas import tpu as pltpu


def gcn_classifier_kernel(a_ref, x_ref, w_ref, b_ref, w12_ref, b12_ref, out_ref):
    gb, n, _ = a_ref.shape                                   # graphs per block, nodes
    h_dim = w_ref.shape[1]

    a = a_ref[...]                                           # [Gb, N, N] bf16 (0/1, exact)

    # Degree with implicit self loop (A+I never materialized); f32 elementwise.
    deg = jnp.sum(a.astype(jnp.float32), axis=2, keepdims=True) + 1.0    # [Gb, N, 1]
    norm = jax.lax.rsqrt(deg)                                # D^{-1/2}

    # One block-wide X W matmul: [Gb*N, D] @ [D, H] (bf16 operands, f32 acc).
    xw = jnp.dot(x_ref[...], w_ref[...],
                 preferred_element_type=jnp.float32)         # [Gb*N, H]
    xw = xw.reshape(gb, n, h_dim)                            # [Gb, N, H] f32

    # D^{-1/2} (A + I) D^{-1/2} (X W) + b ; "+ msg" is the self-loop term.
    msg = norm * xw                                          # src norm, f32
    agg = jnp.einsum('gij,gjh->gih', a, msg.astype(jnp.bfloat16),
                     preferred_element_type=jnp.float32) + msg
    h = jnp.maximum(norm * agg + b_ref[...], 0.0)            # dst norm + bias + ReLU

    # mean_nodes: one sublane (XLU) reduction over the node axis per block.
    hg = jnp.sum(h, axis=1) * (1.0 / n)                      # [Gb, H] f32

    # Fused (classify1 | classify2) head -> lane-dense 128-wide slab per block.
    logits = jnp.dot(hg, w12_ref[...],
                     preferred_element_type=jnp.float32) + b12_ref[...]
    out_ref[...] = logits                                    # [Gb, lanes]


def gcn_classifier(adj, x, w, b, w1, b1, w2, b2, graphs_per_block=None):
    """adj: [G, N, N] (or [N, N]), x: [G, N, D] (or [N, D]).
    Returns (logits1 [G, C], logits2 [G, C])."""
    if adj.ndim == 2:
        adj = adj[None]
        x = x[None]
    G, N, _ = adj.shape
    D, H = w.shape
    C = w1.shape[1]

    # Pick a block of graphs so X@W has >= 128 rows; keep the out-block's
    # second-minor dim a multiple of 8 whenever there is more than one block.
    if graphs_per_block is None:
        graphs_per_block = max(8, ((max(1, 128 // N) + 7) // 8) * 8)
    Gb = G if G <= graphs_per_block else graphs_per_block
    G_pad = pl.cdiv(G, Gb) * Gb
    if G_pad != G:
        adj = jnp.pad(adj, ((0, G_pad - G), (0, 0), (0, 0)))
        x = jnp.pad(x, ((0, G_pad - G), (0, 0), (0, 0)))
    num_blocks = G_pad // Gb

    # Fuse the two heads; pad fused output width to a lane-dense multiple of 128.
    lanes = max(128, ((2 * C + 127) // 128) * 128)
    w12 = jnp.concatenate([w1, w2], axis=1).astype(jnp.float32)          # [H, 2C]
    b12 = jnp.concatenate([b1, b2], axis=1).astype(jnp.float32)          # [1, 2C]
    w12p = jnp.pad(w12, ((0, 0), (0, lanes - 2 * C)))                    # [H, lanes]
    b12p = jnp.pad(b12, ((0, 0), (0, lanes - 2 * C)))                    # [1, lanes]

    # Wrapper-side reshape: X presented as [G_pad*N, D] so the kernel's XW is
    # one big 2-D matmul with no in-kernel sublane-merging reshape.
    x_flat = x.reshape(G_pad * N, D)

    out = pl.pallas_call(
        gcn_classifier_kernel,
        out_shape=jax.ShapeDtypeStruct((G_pad, lanes), jnp.float32),
        grid_spec=pltpu.PrefetchScalarGridSpec(
            num_scalar_prefetch=0,
            grid=(num_blocks,),
            in_specs=[
                pl.BlockSpec((Gb, N, N), lambda g: (g, 0, 0)),     # A, Gb graphs / step
                pl.BlockSpec((Gb * N, D), lambda g: (g, 0)),       # X, Gb graphs / step
                pl.BlockSpec((D, H), lambda g: (0, 0)),            # GraphConv W (resident)
                pl.BlockSpec((1, H), lambda g: (0, 0)),            # GraphConv b (resident)
                pl.BlockSpec((H, lanes), lambda g: (0, 0)),        # fused head W (resident)
                pl.BlockSpec((1, lanes), lambda g: (0, 0)),        # fused head b (resident)
            ],
            out_specs=pl.BlockSpec((Gb, lanes), lambda g: (g, 0)),
        ),
        compiler_params=pltpu.CompilerParams(
            dimension_semantics=("parallel",) if num_blocks > 1 else ("arbitrary",),
        ),
    )(
        adj.astype(jnp.bfloat16),      # 0/1 adjacency: exact in bf16, half the HBM bytes
        x_flat.astype(jnp.bfloat16),
        w.astype(jnp.bfloat16),
        b.astype(jnp.float32),
        w12p,
        b12p,
    )

    logits = out[:G, : 2 * C]                                 # drop pad graphs + pad lanes
    return logits[:, :C], logits[:, C:]


if __name__ == "__main__":
    # Small, module-consistent shapes; enough graphs to exercise a 2-step grid.
    G = 32          # number of graphs (batched Gb=16 per grid step)
    N = 8           # nodes per graph
    IN_DIM = 16     # in_dim (g.ndata['m'] feature width)
    HIDDEN = 32     # hidden_dim
    CLASSES = 4     # n_classes

    key = jax.random.PRNGKey(0)
    k_adj, k_x, k_w, k_b, k_w1, k_b1, k_w2, k_b2 = jax.random.split(key, 8)

    # Symmetric 0/1 adjacency per graph (undirected), no self loops yet.
    upper = (jax.random.uniform(k_adj, (G, N, N)) > 0.5).astype(jnp.float32)
    adj = jnp.triu(upper, 1)
    adj = adj + jnp.swapaxes(adj, -1, -2)

    # Node features g.ndata['m'].
    x = jax.random.normal(k_x, (G, N, IN_DIM), dtype=jnp.float32)

    # Deterministic parameter init (shapes from __init__; synthetic weights).
    w = jax.random.normal(k_w, (IN_DIM, HIDDEN), dtype=jnp.float32) * 0.1     # GraphConv weight
    b = jax.random.normal(k_b, (1, HIDDEN), dtype=jnp.float32) * 0.1          # GraphConv bias
    w1 = jax.random.normal(k_w1, (HIDDEN, CLASSES), dtype=jnp.float32) * 0.1  # classify1.weight.T
    b1 = jax.random.normal(k_b1, (1, CLASSES), dtype=jnp.float32) * 0.1
    w2 = jax.random.normal(k_w2, (HIDDEN, CLASSES), dtype=jnp.float32) * 0.1  # classify2.weight.T
    b2 = jax.random.normal(k_b2, (1, CLASSES), dtype=jnp.float32) * 0.1

    out1, out2 = gcn_classifier(adj, x, w, b, w1, b1, w2, b2)
    jax.block_until_ready((out1, out2))

    # Pure-JAX f32 reference of the same math, per graph.  Tolerance is loose
    # enough to absorb the bf16 MXU-operand rounding applied inside the kernel.
    for g in range(G):
        a_sl = adj[g] + jnp.eye(N)
        norm = jax.lax.rsqrt(jnp.sum(a_sl, axis=1, keepdims=True))
        h_ref = jnp.maximum(norm * (a_sl @ (norm * (x[g] @ w))) + b, 0.0)
        hg_ref = jnp.mean(h_ref, axis=0, keepdims=True)
        ref1 = hg_ref @ w1 + b1
        ref2 = hg_ref @ w2 + b2
        assert jnp.allclose(out1[g], ref1[0], atol=2e-2, rtol=2e-2)
        assert jnp.allclose(out2[g], ref2[0], atol=2e-2, rtol=2e-2)

    print("KERNEL_OK")
</pallas_src>

<mosaic_0001>
module attributes {stable_mosaic.version = 11 : i64} {
  func.func @gcn_classifier_kernel(%arg0: i32, %arg1: memref<16x8x8xbf16, #tpu.memory_space<vmem>>, %arg2: memref<128x16xbf16, #tpu.memory_space<vmem>>, %arg3: memref<16x32xbf16, #tpu.memory_space<vmem>>, %arg4: memref<1x32xf32, #tpu.memory_space<vmem>>, %arg5: memref<32x128xf32, #tpu.memory_space<vmem>>, %arg6: memref<1x128xf32, #tpu.memory_space<vmem>>, %arg7: memref<16x128xf32, #tpu.memory_space<vmem>>) attributes {dimension_semantics = [#tpu.dimension_semantics<parallel>], iteration_bounds = array<i64: 2>, scalar_prefetch = 0 : i64, scratch_operands = 0 : i64, tpu.core_type = #tpu.core_type<tc>, window_params = [{transform_indices = @transform_0, window_bounds = array<i64: 16, 8, 8>}, {transform_indices = @transform_1, window_bounds = array<i64: 128, 16>}, {pipeline_mode = #tpu.pipeline_mode<synchronous>, transform_indices = @transform_2, window_bounds = array<i64: 16, 32>}, {pipeline_mode = #tpu.pipeline_mode<synchronous>, transform_indices = @transform_3, window_bounds = array<i64: 1, 32>}, {pipeline_mode = #tpu.pipeline_mode<synchronous>, transform_indices = @transform_4, window_bounds = array<i64: 32, 128>}, {pipeline_mode = #tpu.pipeline_mode<synchronous>, transform_indices = @transform_5, window_bounds = array<i64: 1, 128>}, {transform_indices = @transform_6, window_bounds = array<i64: 16, 128>}]} {
    %c0 = arith.constant 0 : index
    %c0_0 = arith.constant 0 : index
    %c0_1 = arith.constant 0 : index
    %0 = vector.load %arg1[%c0, %c0_0, %c0_1] : memref<16x8x8xbf16, #tpu.memory_space<vmem>>, vector<16x8x8xbf16>
    %1 = arith.extf %0 : vector<16x8x8xbf16> to vector<16x8x8xf32>
    %cst = arith.constant dense<0.000000e+00> : vector<16x8xf32>
    %2 = vector.multi_reduction <add>, %1, %cst [2] : vector<16x8x8xf32> to vector<16x8xf32>
    %3 = vector.shape_cast %2 : vector<16x8xf32> to vector<16x8x1xf32>
    %cst_2 = arith.constant 1.000000e+00 : f32
    %4 = vector.broadcast %cst_2 : f32 to vector<16x8x1xf32>
    %5 = arith.addf %3, %4 : vector<16x8x1xf32>
    %6 = math.rsqrt %5 : vector<16x8x1xf32>
    %c0_3 = arith.constant 0 : index
    %c0_4 = arith.constant 0 : index
    %7 = vector.load %arg2[%c0_3, %c0_4] : memref<128x16xbf16, #tpu.memory_space<vmem>>, vector<128x16xbf16>
    %c0_5 = arith.constant 0 : index
    %c0_6 = arith.constant 0 : index
    %8 = vector.load %arg3[%c0_5, %c0_6] : memref<16x32xbf16, #tpu.memory_space<vmem>>, vector<16x32xbf16>
    %cst_7 = arith.constant dense<0.000000e+00> : vector<128x32xf32>
    %9 = tpu.matmul %7, %8, %cst_7 {dimension_numbers = #tpu.dot_dimension_numbers<[1], [0], [0], [1], [0, 0, 1, 1], [], []>} : vector<128x16xbf16>, vector<16x32xbf16>, vector<128x32xf32> -> vector<128x32xf32>
    %10 = vector.shape_cast %9 : vector<128x32xf32> to vector<16x8x32xf32>
    %11 = vector.broadcast %6 : vector<16x8x1xf32> to vector<16x8x32xf32>
    %12 = arith.mulf %11, %10 : vector<16x8x32xf32>
    %13 = arith.truncf %12 : vector<16x8x32xf32> to vector<16x8x32xbf16>
    "tpu.trace_start"() <{level = 10 : i32, message = "gij,gjh->gih"}> : () -> ()
    %cst_8 = arith.constant dense<0.000000e+00> : vector<16x8x32xf32>
    %14 = tpu.matmul %0, %13, %cst_8 {dimension_numbers = #tpu.dot_dimension_numbers<[2], [1], [1], [2], [0, 0, 0, 1, 1, 2], [0], [0]>} : vector<16x8x8xbf16>, vector<16x8x32xbf16>, vector<16x8x32xf32> -> vector<16x8x32xf32>
    "tpu.trace_stop"() : () -> ()
    %15 = arith.addf %14, %12 : vector<16x8x32xf32>
    %16 = vector.broadcast %6 : vector<16x8x1xf32> to vector<16x8x32xf32>
    %17 = arith.mulf %16, %15 : vector<16x8x32xf32>
    %c0_9 = arith.constant 0 : index
    %c0_10 = arith.constant 0 : index
    %18 = vector.load %arg4[%c0_9, %c0_10] : memref<1x32xf32, #tpu.memory_space<vmem>>, vector<1x32xf32>
    %19 = vector.shape_cast %18 : vector<1x32xf32> to vector<1x1x32xf32>
    %20 = vector.broadcast %19 : vector<1x1x32xf32> to vector<16x8x32xf32>
    %21 = arith.addf %17, %20 : vector<16x8x32xf32>
    %cst_11 = arith.constant 0.000000e+00 : f32
    %22 = vector.broadcast %cst_11 : f32 to vector<16x8x32xf32>
    %23 = arith.maximumf %21, %22 : vector<16x8x32xf32>
    %cst_12 = arith.constant dense<0.000000e+00> : vector<16x32xf32>
    %24 = vector.multi_reduction <add>, %23, %cst_12 [1] : vector<16x8x32xf32> to vector<16x32xf32>
    %cst_13 = arith.constant 1.250000e-01 : f32
    %25 = vector.broadcast %cst_13 : f32 to vector<16x32xf32>
    %26 = arith.mulf %24, %25 : vector<16x32xf32>
    %c0_14 = arith.constant 0 : index
    %c0_15 = arith.constant 0 : index
    %27 = vector.load %arg5[%c0_14, %c0_15] : memref<32x128xf32, #tpu.memory_space<vmem>>, vector<32x128xf32>
    %cst_16 = arith.constant dense<0.000000e+00> : vector<16x128xf32>
    %28 = tpu.matmul %26, %27, %cst_16 {dimension_numbers = #tpu.dot_dimension_numbers<[1], [0], [0], [1], [0, 0, 1, 1], [], []>} : vector<16x32xf32>, vector<32x128xf32>, vector<16x128xf32> -> vector<16x128xf32>
    %c0_17 = arith.constant 0 : index
    %c0_18 = arith.constant 0 : index
    %29 = vector.load %arg6[%c0_17, %c0_18] : memref<1x128xf32, #tpu.memory_space<vmem>>, vector<1x128xf32>
    %30 = vector.broadcast %29 : vector<1x128xf32> to vector<16x128xf32>
    %31 = arith.addf %28, %30 : vector<16x128xf32>
    %c0_19 = arith.constant 0 : index
    %c0_20 = arith.constant 0 : index
    %32 = vector.load %arg7[%c0_19, %c0_20] : memref<16x128xf32, #tpu.memory_space<vmem>>, vector<16x128xf32>
    tpu.vector_store %arg7[%c0_19, %c0_20], %31 {strides = array<i32>} : memref<16x128xf32, #tpu.memory_space<vmem>>, vector<16x128xf32>,
    return
  }
  func.func @transform_0(%arg0: i32) -> (i32, i32, i32) {
    %c0_i32 = arith.constant 0 : i32
    %c0_i32_0 = arith.constant 0 : i32
    %c0_i32_1 = arith.constant 0 : i32
    return %arg0, %c0_i32, %c0_i32_0 : i32, i32, i32
  }
  func.func @transform_1(%arg0: i32) -> (i32, i32) {
    %c0_i32 = arith.constant 0 : i32
    %c0_i32_0 = arith.constant 0 : i32
    return %arg0, %c0_i32 : i32, i32
  }
  func.func @transform_2(%arg0: i32) -> (i32, i32) {
    %c0_i32 = arith.constant 0 : i32
    %c0_i32_0 = arith.constant 0 : i32
    %c0_i32_1 = arith.constant 0 : i32
    return %c0_i32, %c0_i32_0 : i32, i32
  }
  func.func @transform_3(%arg0: i32) -> (i32, i32) {
    %c0_i32 = arith.constant 0 : i32
    %c0_i32_0 = arith.constant 0 : i32
    %c0_i32_1 = arith.constant 0 : i32
    return %c0_i32, %c0_i32_0 : i32, i32
  }
  func.func @transform_4(%arg0: i32) -> (i32, i32) {
    %c0_i32 = arith.constant 0 : i32
    %c0_i32_0 = arith.constant 0 : i32
    %c0_i32_1 = arith.constant 0 : i32
    return %c0_i32, %c0_i32_0 : i32, i32
  }
  func.func @transform_5(%arg0: i32) -> (i32, i32) {
    %c0_i32 = arith.constant 0 : i32
    %c0_i32_0 = arith.constant 0 : i32
    %c0_i32_1 = arith.constant 0 : i32
    return %c0_i32, %c0_i32_0 : i32, i32
  }
  func.func @transform_6(%arg0: i32) -> (i32, i32) {
    %c0_i32 = arith.constant 0 : i32
    %c0_i32_0 = arith.constant 0 : i32
    return %arg0, %c0_i32 : i32, i32
  }
}

</mosaic_0001>

<bundles_post_ra>
// kernel: tpu_custom_call.1
= control target key start
LH: loop header
LB: loop body
LE: loop exit
PB: predicated region body
PF: predicated region fallthrough
CT: control target
= control target key end

     0   :  { %11 = vsyncpa [#allocation3], 0  ;;  %s2676_s0 = inlined_call_operand.vmem [shape: bf16[32,8,8], index: 0, kind: input, shape index: {}]   ;;  %s2677_s1 = inlined_call_operand.vmem [shape: bf16[256,16], index: 1, kind: input, shape index: {}]   ;;  %s2678_s2 = inlined_call_operand.vmem [shape: bf16[16,32], index: 2, kind: input, shape index: {}]   ;;  %s2679_s3 = inlined_call_operand.vmem [shape: f32[1,32], index: 3, kind: input, shape index: {}]   ;;  %s2680_s4 = inlined_call_operand.vmem [shape: f32[32,128], index: 4, kind: input, shape index: {}]   ;;  %s2681_s5 = inlined_call_operand.vmem [shape: f32[1,128], index: 5, kind: input, shape index: {}]   ;;  %s2682_s6 = inlined_call_operand.hbm [shape: f32[32,128], index: 6, kind: output, shape index: {}]  }
   0x1   :  { %13 = vsyncpa [#allocation3 + $0x1], 0  ;;  %s2155_s21 = smov 0   ;;  %s2157_s22 = smov 0  }
   0x2   :  { %s2159_s23 = smov 0   ;;  %s2161_s24 = smov 0  }
   0x3 LB: > { %s2176_s25 = sadd.s32 4294967295, %s2113_s24   ;;  %s1745_s26 = sadd.s32 4294967294, %s2113_s24   ;;  %s2113_s24 = sphi %s2161_s24, %s2688_s24   ;;  %s2109_s23 = sphi %s2159_s23, %s2687_s23   ;;  %s2105_s22 = sphi %s2157_s22, %s2686_s22   ;;  %s2101_s21 = sphi %s2155_s21, %s2685_s21  }
   0x4   : > { %s2180_s27 = sadd.s32 1, %s2113_s24   ;;  %s162_s28 = sadd.s32 1, %s2109_s23 }
   0x5   : > { %s159_s29 = ssub.s32 %s2113_s24, %s2180_s27  ;;  %p172_p0 = scmp.ne.s32.totalorder %s2109_s23, %s2105_s22 }
   0x6   : > { %p160_p1 = scmp.eq.s32.totalorder %s159_s29, 0  ;;  %p173_p2 = scmp.eq.s32.totalorder %s2176_s25, 1 }
   0x7   : > { %p178_p3 = scmp.ne.s32.totalorder %s2105_s22, %s2101_s21  ;;  %p179_p4 = scmp.eq.s32.totalorder %s1745_s26, 1 }
   0x8   : > { %s2191_s30 = scalar_select %p160_p1, %s2109_s23, %s162_s28  }
   0x9   : > { %p2193_p5 = por %p173_p2, %p172_p0  ;;  %p2197_p6 = por %p179_p4, %p178_p3 }
   0xa   : > { %p1748_p7 = scmp.ge.s32.totalorder %s2113_s24, 1  ;;  %p227_p8 = scmp.lt.s32.totalorder %s2113_s24, 3 }
   0xc   : > { %p228_p9 = pnand %p1748_p7, %p227_p8 }
   0xd   : > { %s1750_s11 = sshll.u32 (!%p228_p9), %s2176_s25, 4  ;;  %s259_s14 = sand.u32 (!%p228_p9), 1, %s2105_s22  }
   0xe   : > { %231 = sbr.rel (%p228_p9) target bundleno = 727 (0x2d7), region = 44  ;;  %p263_p10 = scmp.lt.s32.totalorder (!%p228_p9), %s1750_s11, 31 }
   0xf   : > { %s1796_s20 = sshll.u32 (!%p228_p9), %s2176_s25, 8  ;;  %s2636_s9 = scalar_lea.sflag (!%p228_p9), [#allocation3], %s259_s14 }
  0x10   : > { %s2634_s29 = scalar_lea.hbm (!%p228_p9), %s2682_s6, %s1796_s20  ;;  %s2117_s25 = smov (!%p228_p9), [#allocation2]  }
  0x13   : > { %v2012_v0 = vld [vmem:[%s2678_s2] sm:$0xff]   ;;  %s2690_s11 = smov (!%p263_p10, %s1750_s11), 31  ;;  %vm453_vm0 = vcmask 130048   ;;  %vm308_vm1 = vcmask 64512   ;;  %v2115_v57 = vmov 0.0   ;;  %vm2116_vm2 = vmmov 0  }
  0x14   : > { %1844 = vmatprep.subr.bf16.mxu0 %v2012_v0  ;;  %s1751_s12 = sshll.u32 %s2690_s11, 2  ;;  %1862 = vmatprep.subr.bf16.mxu1 %v2115_v57  ;;  %vm610_vm3 = vcmask 1043456   ;;  %vm1399_vm4 = vcmask 261120   ;;  %vm1555_vm5 = vcmask 1041409   ;;  %vm1557_vm6 = vcmask 1042434   ;;  %s2057_s11 = sshll.u32 %s2117_s25, 4  ;;  %s2058_s11 = int_to_ptr.vmem [resolvable:$false] %s2057_s11 }
  0x15   : > { %1845 = vmatpush3.bf16.msra.mxu0 %v2012_v0  ;;  %s2210_s15 = scalar_lea.vmem %s2677_s1, %s1751_s12  ;;  %s2221_s18 = scalar_lea.vmem %s2676_s0, %s1751_s12  ;;  %1864 = vmatprep.mubr.msk.bf16.mxu1 %vm2116_vm2, %v2115_v57  ;;  %vm1559_vm7 = vcmask 1043459   ;;  %vm1561_vm8 = vcmask 1044484   ;;  %vm1563_vm9 = vcmask 1045509   ;;  %vm1565_vm10 = vcmask 1046534  }
  0x16   : > { %v2013_v1 = vld [vmem:[%s2210_s15] sm:$0xff]   ;;  %v2014_v2 = vld [vmem:[%s2210_s15 + $0x8] sm:$0xff]   ;;  %v2015_v3 = vld [vmem:[%s2210_s15 + $0x10] sm:$0xff]   ;;  %1886 = vmatprep.subr.bf16.mxu0 %v2115_v57  ;;  %vm1567_vm11 = vcmask 1047559   ;;  %s2059_s12 = scalar_lea.vmem %s2058_s11, 512 }
  0x17   : > { %1846 = vmatprep.mubr.msk.bf16.mxu0 %vm453_vm0, %v2013_v1  ;;  %v2224_v4 = vld [vmem:[%s2221_s18] sm:$0xf]  ;;  %v2016_v5 = vld [vmem:[%s2210_s15 + $0x18] sm:$0xff]   ;;  %v2229_v7 = vld [vmem:[%s2221_s18 + $0x8] sm:$0xf] }
  0x18   : > { %1847 = vmatmul.mubr.msk.bf16.vlgmr.msra.gmra.mxu0 %vm453_vm0, %v2014_v2  ;;  %v292_v6 = vunpack.c.l.bf16 %v2224_v4  ;;  %v2232_v8 = vld [vmem:[%s2221_s18 + $0x4] sm:$0xf]  ;;  %v294_v10 = vunpack.c.l.bf16 %v2229_v7  ;;  %v2239_v13 = vld [vmem:[%s2221_s18 + $0xc] sm:$0xf]  ;;  %v2242_v14 = vld [vmem:[%s2221_s18 + $0x10] sm:$0xf] }
  0x19   : > { %1850 = vmatprep.mubr.msk.bf16.mxu0 %vm453_vm0, %v2015_v3  ;;  %v2017_v9 = vld [vmem:[%s2210_s15 + $0x20] sm:$0xff]   ;;  %v293_v11 = vunpack.c.l.bf16 %v2232_v8  ;;  %v295_v16 = vunpack.c.l.bf16 %v2239_v13  ;;  %v2247_v17 = vld [vmem:[%s2221_s18 + $0x14] sm:$0xf]  ;;  %v296_v19 = vunpack.c.l.bf16 %v2242_v14  ;;  %v2256_v22 = vld [vmem:[%s2221_s18 + $0x18] sm:$0xf] }
  0x1a   : > { %v309_v12 = vsel %vm308_vm1, %v292_v6, 0.0  ;;  %v315_v15 = vsel %vm308_vm1, %v294_v10, 0.0  ;;  %v297_v21 = vunpack.c.l.bf16 %v2247_v17  ;;  %v2259_v23 = vld [vmem:[%s2221_s18 + $0x1c] sm:$0xf]  ;;  %v2018_v24 = vld [vmem:[%s2210_s15 + $0x28] sm:$0xff]   ;;  %v298_v26 = vunpack.c.l.bf16 %v2256_v22  ;;  %v2019_v27 = vld [vmem:[%s2210_s15 + $0x30] sm:$0xff]  }
  0x1b   : > { %310 = vadd.xlane.f32.xlu0 %v309_v12  ;;  %316 = vadd.xlane.f32.xlu1 %v315_v15  ;;  %v312_v18 = vsel %vm308_vm1, %v293_v11, 0.0  ;;  %v318_v20 = vsel %vm308_vm1, %v295_v16, 0.0  ;;  %v321_v25 = vsel %vm308_vm1, %v296_v19, 0.0  ;;  %v299_v29 = vunpack.c.l.bf16 %v2259_v23  ;;  %v2268_v30 = vld [vmem:[%s2221_s18 + $0x20] sm:$0xf]  ;;  %v2020_v38 = vld [vmem:[%s2210_s15 + $0x38] sm:$0xff]  }
  0x1c   : > { %v324_v28 = vsel %vm308_vm1, %v297_v21, 0.0  ;;  %v2271_v31 = vld [vmem:[%s2221_s18 + $0x24] sm:$0xf]  ;;  %v327_v32 = vsel %vm308_vm1, %v298_v26, 0.0  ;;  %v300_v33 = vunpack.c.l.bf16 %v2268_v30  ;;  %v2279_v35 = vld [vmem:[%s2221_s18 + $0x28] sm:$0xf] }
  0x1d   : > { %v330_v34 = vsel %vm308_vm1, %v299_v29, 0.0  ;;  %v301_v36 = vunpack.c.l.bf16 %v2271_v31  ;;  %v2283_v37 = vld [vmem:[%s2221_s18 + $0x2c] sm:$0xf]  ;;  %v302_v40 = vunpack.c.l.bf16 %v2279_v35  ;;  %v2290_v42 = vld [vmem:[%s2221_s18 + $0x30] sm:$0xf]  ;;  %s1749_s15 = sshll.u32 %s259_s14, 4 }
  0x1e   : > { %v333_v39 = vsel %vm308_vm1, %v300_v33, 0.0  ;;  %v303_v43 = vunpack.c.l.bf16 %v2283_v37  ;;  %v2294_v44 = vld [vmem:[%s2221_s18 + $0x34] sm:$0xf]  ;;  %v304_v46 = vunpack.c.l.bf16 %v2290_v42  ;;  %v2301_v48 = vld [vmem:[%s2221_s18 + $0x38] sm:$0xf] }
  0x1f   : > { %313 = vadd.xlane.f32.xlu0 %v312_v18  ;;  %319 = vadd.xlane.f32.xlu1 %v318_v20  ;;  %v336_v41 = vsel %vm308_vm1, %v301_v36, 0.0  ;;  %v339_v45 = vsel %vm308_vm1, %v302_v40, 0.0  ;;  %v305_v49 = vunpack.c.l.bf16 %v2294_v44  ;;  %v2305_v50 = vld [vmem:[%s2221_s18 + $0x3c] sm:$0xf]  ;;  %v306_v52 = vunpack.c.l.bf16 %v2301_v48  ;;  %s261_s18 = scalar_lea.vmem [#allocation2], %s1749_s15 }
  0x20   : > { %1851 = vmatmul.mubr.msk.bf16.gmra.mxu0 %vm453_vm0, %v2016_v5  ;;  %v342_v47 = vsel %vm308_vm1, %v303_v43, 0.0  ;;  %v345_v51 = vsel %vm308_vm1, %v304_v46, 0.0  ;;  %v307_v54 = vunpack.c.l.bf16 %v2305_v50  ;;  %s1671_s19 = sshll.u32 %s261_s18, 4  ;;  %s2629_s19 = int_to_ptr.vmem [resolvable:$true] %s1671_s19 }
  0x21   : > { %1854 = vmatprep.mubr.msk.bf16.mxu0 %vm453_vm0, %v2017_v9  ;;  %v348_v53 = vsel %vm308_vm1, %v305_v49, 0.0  ;;  %v351_v55 = vsel %vm308_vm1, %v306_v52, 0.0  ;;  %s2053_s10 = scalar_lea.vmem %s2629_s19, 256  ;;  %p2060_p0 = scmp.lt.s32.totalorder %s2629_s19, %s2058_s11 }
  0x22   : > { %v354_v56 = vsel %vm308_vm1, %v307_v54, 0.0  ;;  %p2054_p11 = scmp.ne.s32.totalorder %s2629_s19, %s2053_s10  ;;  %p2061_p1 = scmp.lt.s32.totalorder %s2059_s12, %s2053_s10 }
  0x23   : > { %322 = vadd.xlane.f32.xlu0 %v321_v25  ;;  %325 = vadd.xlane.f32.xlu1 %v324_v28 }
  0x24   : > { %p2055_p12 = pnand %p2054_p11, %p2193_p5  ;;  %p2062_p2 = por %p2061_p1, %p2060_p0 }
  0x26   : > { %p2056_p13 = pneg %p2055_p12 }
  0x27   : > { %328 = vadd.xlane.f32.xlu0 %v327_v32  ;;  %331 = vadd.xlane.f32.xlu1 %v330_v34 }
  0x28   : > { %1855 = vmatmul.mubr.msk.bf16.gmra.mxu0 %vm453_vm0, %v2018_v24  ;;  %p2063_p3 = pnand %p2062_p2, %p2056_p13 }
  0x29   : > { %1858 = vmatprep.mubr.msk.bf16.mxu0 %vm453_vm0, %v2019_v27 }
  0x2b   : > { %334 = vadd.xlane.f32.xlu0 %v333_v39  ;;  %337 = vadd.xlane.f32.xlu1 %v336_v41 }
  0x2f   : > { %340 = vadd.xlane.f32.xlu0 %v339_v45  ;;  %343 = vadd.xlane.f32.xlu1 %v342_v47 }
  0x30   : > { %1859 = vmatmul.mubr.msk.bf16.gmra.mxu0 %vm453_vm0, %v2020_v38 }
  0x31   : > { %1888 = vmatprep.mubr.msk.bf16.mxu0 %vm2116_vm2, %v2115_v57 }
  0x33   : > { %346 = vadd.xlane.f32.xlu0 %v345_v51  ;;  %349 = vadd.xlane.f32.xlu1 %v348_v53 }
  0x37   : > { %352 = vadd.xlane.f32.xlu0 %v351_v55  ;;  %355 = vadd.xlane.f32.xlu1 %v354_v56 }
  0xa4   : > { %v311_v58 = vpop.xlane.xlu0 %310  ;;  %v317_v63 = vpop.xlane.xlu1 %316 }
  0xa5   : > { %v357_v61 = vadd.f32 1.0, %v311_v58  ;;  %v359_v2 = vadd.f32 1.0, %v317_v63 }
  0xa7   : > { %2021 = vrsqrt.f32 %v357_v61 }
  0xa8   : > { %v314_v59 = vpop.xlane.xlu0 %313  ;;  %v320_v5 = vpop.xlane.xlu1 %319 }
  0xa9   : > { %v358_v0 = vadd.f32 1.0, %v314_v59  ;;  %v360_v9 = vadd.f32 1.0, %v320_v5 }
  0xab   : > { %2023 = vrsqrt.f32 %v358_v0 }
  0xac   : > { %v323_v60 = vpop.xlane.xlu0 %322  ;;  %v326_v18 = vpop.xlane.xlu1 %325 }
  0xad   : > { %v361_v3 = vadd.f32 1.0, %v323_v60  ;;  %v362_v21 = vadd.f32 1.0, %v326_v18 }
  0xb0   : > { %v329_v62 = vpop.xlane.xlu0 %328  ;;  %v332_v47 = vpop.xlane.xlu1 %331 }
  0xb1   : > { %v363_v1 = vadd.f32 1.0, %v329_v62  ;;  %v364_v55 = vadd.f32 1.0, %v332_v47 }
  0xb3   : > { %2025 = vrsqrt.f32 %v363_v1 }
  0xb4   : > { %2027 = vrsqrt.f32 %v359_v2  ;;  %v335_v6 = vpop.xlane.xlu0 %334  ;;  %v2319_v11 = vpop.eup %2021 }
  0xb5   : > { %2029 = vrsqrt.f32 %v361_v3  ;;  %v365_v10 = vadd.f32 1.0, %v335_v6  ;;  %v338_v2 = vpop.xlane.xlu1 %337 }
  0xb6   : > { %2031 = vrsqrt.f32 %v360_v9  ;;  %v366_v5 = vadd.f32 1.0, %v338_v2 }
  0xb7   : > { %2033 = vrsqrt.f32 %v365_v10 }
  0xb8   : > { %v341_v16 = vpop.xlane.xlu0 %340  ;;  %v2324_v20 = vpop.eup %2023  ;;  %2035 = vrsqrt.f32 %v362_v21 }
  0xb9   : > { %v367_v26 = vadd.f32 1.0, %v341_v16 }
  0xbb   : > { %2037 = vrsqrt.f32 %v367_v26  ;;  %v344_v26 = vpop.xlane.xlu1 %343 }
  0xbc   : > { %v347_v41 = vpop.xlane.xlu0 %346 }
  0xbd   : > { %v369_v53 = vadd.f32 1.0, %v347_v41 }
  0xbf   : > { %2039 = vrsqrt.f32 %v369_v53 }
  0xc0   : > { %v2328_v27 = vpop.eup %2025  ;;  %v353_v63 = vpop.xlane.xlu0 %352  ;;  %2041 = vrsqrt.f32 %v364_v55 }
  0xc1   : > { %v2330_v29 = vpop.eup %2027  ;;  %2043 = vrsqrt.f32 %v366_v5 }
  0xc2   : > { %v2336_v34 = vpop.eup %2029 }
  0xd8   : > { %v1848_v12 = vpop.f32.mrf.mxu0 }
  0xd9   : > { %v2345_v43 = vmul.f32 %v2330_v29, %v1848_v12 }
  0xda   : > { %v512_v15 = vpop.f32.mrf.mxu0 }
  0xdb   : > { %v2322_v19 = vmul.f32 %v2319_v11, %v512_v15  ;;  %v593_v56 = vpack.c.bf16 %v2345_v43, %v2345_v43 }
  0xdc   : > { %v1849_v24 = vpop.f32.mrf.mxu0 }
  0xdd   : > { %v591_v25 = vpack.c.bf16 %v2322_v19, %v2322_v19  ;;  %v704_v1 = vsel %vm610_vm3, %v593_v56, 0 }
  0xde   : > { %v515_v28 = vpop.f32.mrf.mxu0 }
  0xdf   : > { %v2333_v32 = vmul.f32 %v2324_v20, %v515_v28  ;;  %v612_v33 = vsel %vm610_vm3, %v591_v25, 0 }
  0xe0   : > { %v1852_v36 = vpop.f32.mrf.mxu0  ;;  %1863 = vmatpush3.bf16.msra.mxu1 %v612_v33 }
  0xe1   : > { %v592_v38 = vpack.c.bf16 %v2333_v32, %v2333_v32  ;;  %v2341_v39 = vmul.f32 %v2328_v27, %v1852_v36  ;;  %1868 = vmatprep.subr.bf16.mxu1 %v2115_v57  ;;  %v368_v36 = vadd.f32 1.0, %v344_v26 }
  0xe2   : > { %v528_v40 = vpop.f32.mrf.mxu0 }
  0xe3   : > { %v2348_v45 = vmul.f32 %v2336_v34, %v528_v40  ;;  %1865 = vmatmul.mubr.msk.bf16.vlgmr.msra.gmra.mxu1 %vm308_vm1, %v2224_v4  ;;  %v658_v46 = vsel %vm610_vm3, %v592_v38, 0  ;;  %v597_v51 = vpack.c.bf16 %v2341_v39, %v2341_v39  ;;  %v2362_v4 = vpop.eup %2031 }
  0xe4   : > { %v2353_v49 = vpop.f32.mrf.mxu0  ;;  %1869 = vmatpush3.bf16.msra.mxu1 %v658_v46  ;;  %1870 = vmatprep.mubr.msk.bf16.mxu1 %vm2116_vm2, %v2115_v57  ;;  %v2367_v59 = vpop.eup %2033  ;;  %v2372_v0 = vmul.f32 %v2362_v4, %v1849_v24 }
  0xe5   : > { %v595_v52 = vpack.c.bf16 %v2348_v45, %v2348_v45  ;;  %1874 = vmatprep.subr.bf16.mxu1 %v2115_v57  ;;  %v888_v61 = vsel %vm610_vm3, %v597_v51, 0  ;;  %v2384_v9 = vpop.eup %2035  ;;  %v350_v51 = vpop.xlane.xlu1 %349 }
  0xe6   : > { %v531_v54 = vpop.f32.mrf.mxu0  ;;  %v594_v15 = vpack.c.bf16 %v2372_v0, %v2372_v0  ;;  %v370_v53 = vadd.f32 1.0, %v350_v51 }
  0xe7   : > { %v796_v58 = vsel %vm610_vm3, %v595_v52, 0  ;;  %v2399_v16 = vmul.f32 %v2384_v9, %v531_v54 }
  0xe8   : > { %1887 = vmatpush3.bf16.msra.mxu0 %v796_v58  ;;  %v1856_v60 = vpop.f32.mrf.mxu0  ;;  %v750_v25 = vsel %vm610_vm3, %v594_v15, 0 }
  0xe9   : > { %1898 = vmatprep.subr.bf16.mxu0 %v2115_v57  ;;  %v596_v28 = vpack.c.bf16 %v2399_v16, %v2399_v16 }
  0xea   : > { %v544_v62 = vpop.f32.mrf.mxu0 }
  0xeb   : > { %1871 = vmatmul.mubr.msk.bf16.vlgmr.msra.gmra.mxu1 %vm308_vm1, %v2232_v8  ;;  %1889 = vmatmul.mubr.msk.bf16.vlgmr.msra.gmra.mxu0 %vm308_vm1, %v2242_v14  ;;  %v2380_v3 = vmul.f32 %v2367_v59, %v544_v62  ;;  %v371_v8 = vadd.f32 1.0, %v353_v63  ;;  %v2391_v14 = vpop.eup %2037  ;;  %v842_v40 = vsel %vm610_vm3, %v596_v28, 0 }
  0xec   : > { %1875 = vmatpush3.bf16.msra.mxu1 %v704_v1  ;;  %1899 = vmatpush3.bf16.msra.mxu0 %v888_v61  ;;  %v2382_v6 = vpop.f32.mrf.mxu0  ;;  %v2402_v18 = vmul.f32 %v2391_v14, %v1856_v60  ;;  %v356_v60 = vpop.xlane.xlu1 %355 }
  0xed   : > { %v599_v10 = vpack.c.bf16 %v2380_v3, %v2380_v3  ;;  %1876 = vmatprep.mubr.msk.bf16.mxu1 %vm2116_vm2, %v2115_v57  ;;  %1880 = vmatprep.subr.bf16.mxu1 %v2115_v57  ;;  %2045 = vrsqrt.f32 %v371_v8 }
  0xee   : > { %1900 = vmatprep.mubr.msk.bf16.mxu0 %vm2116_vm2, %v2115_v57  ;;  %1910 = vmatprep.subr.bf16.mxu0 %v2115_v57  ;;  %v547_v12 = vpop.f32.mrf.mxu0  ;;  %v601_v33 = vpack.c.bf16 %v2402_v18, %v2402_v18  ;;  %2047 = vrsqrt.f32 %v368_v36 }
  0xef   : > { %v980_v21 = vsel %vm610_vm3, %v599_v10, 0  ;;  %2049 = vrsqrt.f32 %v370_v53 }
  0xf0   : > { %v1860_v24 = vpop.f32.mrf.mxu0  ;;  %v1072_v41 = vsel %vm610_vm3, %v601_v33, 0 }
  0xf3   : > { %1877 = vmatmul.mubr.msk.bf16.vlgmr.msra.gmra.mxu1 %vm308_vm1, %v2229_v7  ;;  %1901 = vmatmul.mubr.msk.bf16.vlgmr.msra.gmra.mxu0 %vm308_vm1, %v2256_v22  ;;  %v2417_v7 = vpop.eup %2039  ;;  %v560_v22 = vpop.f32.mrf.mxu0 }
  0xf4   : > { %1881 = vmatpush3.bf16.msra.mxu1 %v750_v25  ;;  %1911 = vmatpush3.bf16.msra.mxu0 %v980_v21  ;;  %v2422_v38 = vpop.eup %2041  ;;  %v2427_v46 = vmul.f32 %v2417_v7, %v560_v22  ;;  %v1530_v25 = vld [vmem:[%s2680_s4 + $0x10] sm:$0xff] }
  0xf5   : > { %1882 = vmatprep.mubr.msk.bf16.mxu1 %vm2116_vm2, %v2115_v57  ;;  %1892 = vmatprep.subr.bf16.mxu1 %v2115_v57  ;;  %v2431_v47 = vmul.f32 %v2422_v38, %v2353_v49  ;;  %v2437_v52 = vpop.eup %2043  ;;  %v1861_v2 = vpop.f32.mrf.mxu0 }
  0xf6   : > { %1912 = vmatprep.mubr.msk.bf16.mxu0 %vm2116_vm2, %v2115_v57  ;;  %1922 = vmatprep.subr.bf16.mxu0 %v2115_v57  ;;  %v603_v54 = vpack.c.bf16 %v2427_v46, %v2427_v46 }
  0xf8   : > { %v1164_v56 = vsel %vm610_vm3, %v603_v54, 0 }
  0xfa   : > { %v2444_v49 = vpop.eup %2045 }
  0xfb   : > { %1883 = vmatmul.mubr.msk.bf16.vlgmr.msra.gmra.mxu1 %vm308_vm1, %v2239_v13  ;;  %1913 = vmatmul.mubr.msk.bf16.vlgmr.msra.gmra.mxu0 %vm308_vm1, %v2268_v30  ;;  %v598_v13 = vpack.c.bf16 %v2431_v47, %v2431_v47  ;;  %v2452_v30 = vmul.f32 %v2437_v52, %v547_v12  ;;  %v2455_v55 = vmul.f32 %v2444_v49, %v1860_v24 }
  0xfc   : > { %1893 = vmatpush3.bf16.msra.mxu1 %v842_v40  ;;  %1923 = vmatpush3.bf16.msra.mxu0 %v1072_v41 }
  0xfd   : > { %1894 = vmatprep.mubr.msk.bf16.mxu1 %vm2116_vm2, %v2115_v57  ;;  %1904 = vmatprep.subr.bf16.mxu1 %v2115_v57  ;;  %v934_v58 = vsel %vm610_vm3, %v598_v13, 0  ;;  %v600_v61 = vpack.c.bf16 %v2452_v30, %v2452_v30  ;;  %v605_v62 = vpack.c.bf16 %v2455_v55, %v2455_v55 }
  0xfe   : > { %1924 = vmatprep.mubr.msk.bf16.mxu0 %vm2116_vm2, %v2115_v57  ;;  %1934 = vmatprep.subr.bf16.mxu0 %v2115_v57 }
  0xff   : > { %v1026_v63 = vsel %vm610_vm3, %v600_v61, 0  ;;  %v1256_v1 = vsel %vm610_vm3, %v605_v62, 0 }
 0x103   : > { %1895 = vmatmul.mubr.msk.bf16.vlgmr.msra.gmra.mxu1 %vm308_vm1, %v2247_v17  ;;  %1925 = vmatmul.mubr.msk.bf16.vlgmr.msra.gmra.mxu0 %vm308_vm1, %v2279_v35  ;;  %v372_v17 = vadd.f32 1.0, %v356_v60  ;;  %v2473_v35 = vpop.eup %2047 }
 0x104   : > { %1905 = vmatpush3.bf16.msra.mxu1 %v934_v58  ;;  %1935 = vmatpush3.bf16.msra.mxu0 %v1164_v56  ;;  %v2479_v5 = vmul.f32 %v2473_v35, %v2382_v6  ;;  %v2488_v10 = vpop.eup %2049  ;;  %v563_v6 = vpop.f32.mrf.mxu0  ;;  %v2546_v56 = vld [vmem:[%s2679_s3] ss:$0 sm:$0xff] }
 0x105   : > { %1906 = vmatprep.mubr.msk.bf16.mxu1 %vm2116_vm2, %v2115_v57  ;;  %1916 = vmatprep.subr.bf16.mxu1 %v2115_v57  ;;  %2051 = vrsqrt.f32 %v372_v17 }
 0x106   : > { %1936 = vmatprep.mubr.msk.bf16.mxu0 %vm2116_vm2, %v2115_v57  ;;  %1946 = vmatprep.subr.bf16.mxu0 %v2115_v57  ;;  %v602_v8 = vpack.c.bf16 %v2479_v5, %v2479_v5 }
 0x10b   : > { %1907 = vmatmul.mubr.msk.bf16.vlgmr.msra.gmra.mxu1 %vm308_vm1, %v2259_v23  ;;  %1937 = vmatmul.mubr.msk.bf16.vlgmr.msra.gmra.mxu0 %vm308_vm1, %v2290_v42  ;;  %v2495_v23 = vmul.f32 %v2488_v10, %v563_v6  ;;  %v1118_v42 = vsel %vm610_vm3, %v602_v8, 0 }
 0x10c   : > { %1917 = vmatpush3.bf16.msra.mxu1 %v1026_v63  ;;  %1947 = vmatpush3.bf16.msra.mxu0 %v1256_v1 }
 0x10d   : > { %1918 = vmatprep.mubr.msk.bf16.mxu1 %vm2116_vm2, %v2115_v57  ;;  %1928 = vmatprep.subr.bf16.mxu1 %v2115_v57  ;;  %v604_v12 = vpack.c.bf16 %v2495_v23, %v2495_v23 }
 0x10e   : > { %1948 = vmatprep.mubr.msk.bf16.mxu0 %vm2116_vm2, %v2115_v57 }
 0x10f   : > { %v1210_v21 = vsel %vm610_vm3, %v604_v12, 0 }
 0x112   : > { %v2507_v15 = vpop.eup %2051 }
 0x113   : > { %1919 = vmatmul.mubr.msk.bf16.vlgmr.msra.gmra.mxu1 %vm308_vm1, %v2271_v31  ;;  %1949 = vmatmul.mubr.msk.bf16.vlgmr.msra.gmra.mxu0 %vm308_vm1, %v2301_v48  ;;  %v2511_v31 = vmul.f32 %v2507_v15, %v1861_v2 }
 0x114   : > { %1929 = vmatpush3.bf16.msra.mxu1 %v1118_v42  ;;  %1930 = vmatprep.mubr.msk.bf16.mxu1 %vm2116_vm2, %v2115_v57 }
 0x115   : > { %1940 = vmatprep.subr.bf16.mxu1 %v2115_v57  ;;  %v606_v48 = vpack.c.bf16 %v2511_v31, %v2511_v31 }
 0x117   : > { %v1302_v24 = vsel %vm610_vm3, %v606_v48, 0 }
 0x11b   : > { %1931 = vmatmul.mubr.msk.bf16.vlgmr.msra.gmra.mxu1 %vm308_vm1, %v2283_v37  ;;  %v1531_v37 = vld [vmem:[%s2680_s4 + $0x18] sm:$0xff] }
 0x11c   : > { %1941 = vmatpush3.bf16.msra.mxu1 %v1210_v21  ;;  %1942 = vmatprep.mubr.msk.bf16.mxu1 %vm2116_vm2, %v2115_v57 }
 0x11d   : > { %1952 = vmatprep.subr.bf16.mxu1 %v2115_v57  ;;  %1958 = vmatprep.subr.mxu0 %v1531_v37 }
 0x11e   : > { %1959 = vmatpush3.msra.mxu0 %v1531_v37 }
 0x11f   : > { %1960 = vmatprep.subr.mxu0 %v1530_v25 }
 0x120   : > { %1961 = vmatpush3.msra.mxu0 %v1530_v25 }
 0x123   : > { %1943 = vmatmul.mubr.msk.bf16.vlgmr.msra.gmra.mxu1 %vm308_vm1, %v2294_v44  ;;  %v1529_v44 = vld [vmem:[%s2680_s4 + $0x8] sm:$0xff] }
 0x124   : > { %1953 = vmatpush3.bf16.msra.mxu1 %v1302_v24  ;;  %1954 = vmatprep.mubr.msk.bf16.mxu1 %vm2116_vm2, %v2115_v57 }
 0x125   : > { %1962 = vmatprep.subr.mxu0 %v1529_v44 }
 0x126   : > { %1963 = vmatpush3.msra.mxu0 %v1529_v44 }
 0x12b   : > { %1955 = vmatmul.mubr.msk.bf16.vlgmr.msra.gmra.mxu1 %vm308_vm1, %v2305_v50  ;;  %v1528_v50 = vld [vmem:[%s2680_s4] sm:$0xff] }
 0x12c   : > { %1964 = vmatprep.subr.mxu0 %v1528_v50 }
 0x12d   : > { %1965 = vmatpush3.msra.mxu0 %v1528_v50 }
 0x1a3   : > { %v648_v57 = vpop.f32.mrf.mxu1 }
 0x1a4   : > { %v649_v22 = vadd.f32 %v648_v57, %v2322_v19 }
 0x1a5   : > { %v1866_v26 = vpop.f32.mrf.mxu1 }
 0x1a6   : > { %v1344_v13 = vmul.f32 %v2319_v11, %v649_v22 }
 0x1a7   : > { %v651_v28 = vpop.f32.mrf.mxu1 }
 0x1a9   : > { %v1867_v33 = vpop.f32.mrf.mxu1 }
 0x1ab   : > { %v694_v36 = vpop.f32.mrf.mxu1  ;;  %v832_v40 = vpop.f32.mrf.mxu0 }
 0x1ac   : > { %v695_v41 = vadd.f32 %v694_v36, %v2333_v32  ;;  %v833_v58 = vadd.f32 %v832_v40, %v2348_v45  ;;  %v1367_v32 = vadd.f32 %v2546_v56, %v1344_v13 }
 0x1ad   : > { %v1872_v51 = vpop.f32.mrf.mxu1  ;;  %v1890_v53 = vpop.f32.mrf.mxu0 }
 0x1ae   : > { %v1345_v54 = vmul.f32 %v2324_v20, %v695_v41  ;;  %v1348_v63 = vmul.f32 %v2336_v34, %v833_v58  ;;  %v1383_v12 = vmax.f32 %v1367_v32, 0.0 }
 0x1af   : > { %v697_v60 = vpop.f32.mrf.mxu1  ;;  %v835_v61 = vpop.f32.mrf.mxu0 }
 0x1b0   : > { %v1368_v19 = vadd.f32 %v2546_v56, %v1345_v54  ;;  %v1371_v21 = vadd.f32 %v2546_v56, %v1348_v63 }
 0x1b1   : > { %v1873_v62 = vpop.f32.mrf.mxu1  ;;  %v1891_v17 = vpop.f32.mrf.mxu0 }
 0x1b2   : > { %v1384_v11 = vmax.f32 %v1368_v19, 0.0  ;;  %v1387_v26 = vmax.f32 %v1371_v21, 0.0 }
 0x1b3   : > { %v740_v20 = vpop.f32.mrf.mxu1  ;;  %v924_v1 = vpop.f32.mrf.mxu0 }
 0x1b4   : > { %v741_v2 = vadd.f32 %v740_v20, %v2345_v43  ;;  %v925_v6 = vadd.f32 %v924_v1, %v2341_v39  ;;  %v1407_v37 = vsel %vm1399_vm4, %v1384_v11, 0.0  ;;  %v1400_v39 = vsel %vm1399_vm4, %v1383_v12, 0.0 }
 0x1b5   : > { %v1878_v8 = vpop.f32.mrf.mxu1  ;;  %v1902_v42 = vpop.f32.mrf.mxu0  ;;  %v1408_v57 = vrot.slane %v1407_v37, 4  ;;  %v1401_v51 = vrot.slane %v1400_v39, 4  ;;  %v1428_v13 = vsel %vm1399_vm4, %v1387_v26, 0.0 }
 0x1b6   : > { %v1346_v45 = vmul.f32 %v2330_v29, %v741_v2  ;;  %v1350_v25 = vmul.f32 %v2328_v27, %v925_v6 }
 0x1b7   : > { %v743_v48 = vpop.f32.mrf.mxu1  ;;  %v927_v24 = vpop.f32.mrf.mxu0  ;;  %v1409_v54 = vadd.f32 %v1408_v57, %v1407_v37  ;;  %v1402_v32 = vadd.f32 %v1401_v51, %v1400_v39 }
 0x1b8   : > { %v1369_v34 = vadd.f32 %v2546_v56, %v1346_v45  ;;  %v1373_v36 = vadd.f32 %v2546_v56, %v1350_v25 }
 0x1b9   : > { %v1879_v44 = vpop.f32.mrf.mxu1  ;;  %v1903_v43 = vpop.f32.mrf.mxu0  ;;  %v1410_v1 = vrot.slane %v1409_v54, 2  ;;  %v1403_v21 = vrot.slane %v1402_v32, 2 }
 0x1ba   : > { %v1385_v50 = vmax.f32 %v1369_v34, 0.0  ;;  %v1389_v19 = vmax.f32 %v1373_v36, 0.0 }
 0x1bb   : > { %v786_v29 = vpop.f32.mrf.mxu1  ;;  %v1016_v28 = vpop.f32.mrf.mxu0  ;;  %v1411_v34 = vadd.f32 %v1410_v1, %v1409_v54 }
 0x1bc   : > { %v1414_v33 = vsel %vm1399_vm4, %v1385_v50, 0.0  ;;  %v787_v22 = vadd.f32 %v786_v29, %v2372_v0  ;;  %v1429_v0 = vrot.slane %v1428_v13, 4  ;;  %v1442_v8 = vsel %vm1399_vm4, %v1389_v19, 0.0 }
 0x1bd   : > { %v1884_v40 = vpop.f32.mrf.mxu1  ;;  %v1914_v41 = vpop.f32.mrf.mxu0  ;;  %v1415_v53 = vrot.slane %v1414_v33, 4  ;;  %v1017_v44 = vadd.f32 %v1016_v28, %v2380_v3  ;;  %v1443_v39 = vrot.slane %v1442_v8, 4 }
 0x1be   : > { %v1347_v27 = vmul.f32 %v2362_v4, %v787_v22  ;;  %v1430_v48 = vadd.f32 %v1429_v0, %v1428_v13  ;;  %v1412_v41 = vrot.slane %v1411_v34, 1 }
 0x1bf   : > { %v789_v58 = vpop.f32.mrf.mxu1  ;;  %v1019_v60 = vpop.f32.mrf.mxu0  ;;  %v1416_v63 = vadd.f32 %v1415_v53, %v1414_v33  ;;  %v1404_v33 = vadd.f32 %v1403_v21, %v1402_v32  ;;  %v1444_v54 = vadd.f32 %v1443_v39, %v1442_v8 }
 0x1c0   : > { %v1370_v61 = vadd.f32 %v2546_v56, %v1347_v27  ;;  %v1431_v22 = vrot.slane %v1430_v48, 2  ;;  %v1413_v0 = vadd.f32 %v1412_v41, %v1411_v34 }
 0x1c1   : > { %v1885_v62 = vpop.f32.mrf.mxu1  ;;  %v1915_v17 = vpop.f32.mrf.mxu0  ;;  %v1417_v24 = vrot.slane %v1416_v63, 2  ;;  %v1405_v19 = vrot.slane %v1404_v33, 1 }
 0x1c2   : > { %v1386_v20 = vmax.f32 %v1370_v61, 0.0  ;;  %v1432_v62 = vadd.f32 %v1431_v22, %v1430_v48  ;;  %v1513_v48 = vmul.f32 0.125, %v1413_v0 }
 0x1c3   : > { %v878_v11 = vpop.f32.mrf.mxu1  ;;  %v1108_v2 = vpop.f32.mrf.mxu0  ;;  %v1418_v36 = vadd.f32 %v1417_v24, %v1416_v63 }
 0x1c4   : > { %v1421_v6 = vsel %vm1399_vm4, %v1386_v20, 0.0  ;;  %v879_v4 = vadd.f32 %v878_v11, %v2399_v16  ;;  %v1109_v28 = vadd.f32 %v1108_v2, %v2402_v18 }
 0x1c5   : > { %v1422_v42 = vrot.slane %v1421_v6, 4  ;;  %v1896_v45 = vpop.f32.mrf.mxu1  ;;  %v1926_v12 = vpop.f32.mrf.mxu0  ;;  %v1419_v17 = vrot.slane %v1418_v36, 1 }
 0x1c6   : > { %v1349_v37 = vmul.f32 %v2384_v9, %v879_v4  ;;  %v1352_v9 = vmul.f32 %v2367_v59, %v1017_v44  ;;  %v1354_v18 = vmul.f32 %v2391_v14, %v1109_v28  ;;  %v1433_v45 = vrot.slane %v1432_v62, 1 }
 0x1c7   : > { %v1423_v25 = vadd.f32 %v1422_v42, %v1421_v6  ;;  %v881_v43 = vpop.f32.mrf.mxu1  ;;  %v1111_v50 = vpop.f32.mrf.mxu0  ;;  %v1445_v6 = vrot.slane %v1444_v54, 2  ;;  %v1420_v12 = vadd.f32 %v1419_v17, %v1418_v36 }
 0x1c8   : > { %v1372_v57 = vadd.f32 %v2546_v56, %v1349_v37  ;;  %v1375_v59 = vadd.f32 %v2546_v56, %v1352_v9  ;;  %v1377_v43 = vadd.f32 %v2546_v56, %v1354_v18  ;;  %v1434_v22 = vadd.f32 %v1433_v45, %v1432_v62 }
 0x1c9   : > { %v1424_v16 = vrot.slane %v1423_v25, 2  ;;  %v1897_v26 = vpop.f32.mrf.mxu1  ;;  %v1927_v29 = vpop.f32.mrf.mxu0  ;;  %v1446_v44 = vadd.f32 %v1445_v6, %v1444_v54  ;;  %v1514_v36 = vmul.f32 0.125, %v1420_v12 }
 0x1ca   : > { %v1388_v40 = vmax.f32 %v1372_v57, 0.0  ;;  %v1391_v37 = vmax.f32 %v1375_v59, 0.0  ;;  %v1393_v28 = vmax.f32 %v1377_v43, 0.0 }
 0x1cb   : > { %v1425_v51 = vadd.f32 %v1424_v16, %v1423_v25  ;;  %v970_v53 = vpop.f32.mrf.mxu1  ;;  %v1200_v27 = vpop.f32.mrf.mxu0 }
 0x1cc   : > { %v1435_v3 = vsel %vm1399_vm4, %v1388_v40, 0.0  ;;  %v971_v13 = vadd.f32 %v970_v53, %v2431_v47  ;;  %v1201_v4 = vadd.f32 %v1200_v27, %v2427_v46 }
 0x1cd   : > { %v1436_v58 = vrot.slane %v1435_v3, 4  ;;  %v1908_v60 = vpop.f32.mrf.mxu1  ;;  %v1938_v61 = vpop.f32.mrf.mxu0  ;;  %v1426_v63 = vrot.slane %v1425_v51, 1 }
 0x1ce   : > { %v1351_v32 = vmul.f32 %v2422_v38, %v971_v13  ;;  %v1406_v38 = vadd.f32 %v1405_v19, %v1404_v33  ;;  %v1356_v16 = vmul.f32 %v2417_v7, %v1201_v4  ;;  %v1516_v19 = vmul.f32 0.125, %v1434_v22 }
 0x1cf   : > { %v1437_v20 = vadd.f32 %v1436_v58, %v1435_v3  ;;  %v973_v1 = vpop.f32.mrf.mxu1  ;;  %v1203_v11 = vpop.f32.mrf.mxu0  ;;  %v1427_v24 = vadd.f32 %v1426_v63, %v1425_v51  ;;  %v1456_v3 = vsel %vm1399_vm4, %v1391_v37, 0.0 }
 0x1d0   : > { %v1374_v47 = vadd.f32 %v2546_v56, %v1351_v32  ;;  %v1512_v41 = vmul.f32 0.125, %v1406_v38  ;;  %v1379_v13 = vadd.f32 %v2546_v56, %v1356_v16  ;;  %v1457_v32 = vrot.slane %v1456_v3, 4 }
 0x1d1   : > { %v1438_v2 = vrot.slane %v1437_v20, 2  ;;  %v1909_v8 = vpop.f32.mrf.mxu1  ;;  %v1939_v42 = vpop.f32.mrf.mxu0  ;;  %v1515_v51 = vmul.f32 0.125, %v1427_v24  ;;  %v1470_v1 = vsel %vm1399_vm4, %v1393_v28, 0.0 }
 0x1d2   : > { %v1390_v21 = vmax.f32 %v1374_v47, 0.0  ;;  %v1395_v18 = vmax.f32 %v1379_v13, 0.0  ;;  %v1471_v45 = vrot.slane %v1470_v1, 4 }
 0x1d3   : > { %v1439_v34 = vadd.f32 %v1438_v2, %v1437_v20  ;;  %v1062_v25 = vpop.f32.mrf.mxu1  ;;  %v1292_v14 = vpop.f32.mrf.mxu0 }
 0x1d4   : > { %v1449_v50 = vsel %vm1399_vm4, %v1390_v21, 0.0  ;;  %v1063_v46 = vadd.f32 %v1062_v25, %v2452_v30  ;;  %v1293_v26 = vadd.f32 %v1292_v14, %v2455_v55  ;;  %v1447_v30 = vrot.slane %v1446_v44, 1 }
 0x1d5   : > { %v1440_v39 = vrot.slane %v1439_v34, 1  ;;  %v1450_v57 = vrot.slane %v1449_v50, 4  ;;  %v1920_v29 = vpop.f32.mrf.mxu1  ;;  %v1950_v33 = vpop.f32.mrf.mxu0  ;;  %v1484_v25 = vsel %vm1399_vm4, %v1395_v18, 0.0 }
 0x1d6   : > { %v1353_v40 = vmul.f32 %v2437_v52, %v1063_v46  ;;  %v1358_v58 = vmul.f32 %v2444_v49, %v1293_v26  ;;  %v1556_v52 = vsel %vm1555_vm5, %v1513_v48, %v1512_v41  ;;  %v1448_v6 = vadd.f32 %v1447_v30, %v1446_v44 }
 0x1d7   : > { %v1441_v9 = vadd.f32 %v1440_v39, %v1439_v34  ;;  %v1451_v53 = vadd.f32 %v1450_v57, %v1449_v50  ;;  %v1065_v27 = vpop.f32.mrf.mxu1  ;;  %v1295_v54 = vpop.f32.mrf.mxu0  ;;  %v1558_v17 = vsel %vm1557_vm6, %v1514_v36, %v1556_v52  ;;  %v1458_v34 = vadd.f32 %v1457_v32, %v1456_v3 }
 0x1d8   : > { %v1376_v7 = vadd.f32 %v2546_v56, %v1353_v40  ;;  %v1560_v20 = vsel %vm1559_vm7, %v1515_v51, %v1558_v17  ;;  %v1381_v2 = vadd.f32 %v2546_v56, %v1358_v58  ;;  %v1518_v37 = vmul.f32 0.125, %v1448_v6 }
 0x1d9   : > { %v1452_v55 = vrot.slane %v1451_v53, 2  ;;  %v1921_v60 = vpop.f32.mrf.mxu1  ;;  %v1951_v61 = vpop.f32.mrf.mxu0  ;;  %v1517_v59 = vmul.f32 0.125, %v1441_v9  ;;  %v1562_v38 = vsel %vm1561_vm8, %v1516_v19, %v1560_v20  ;;  %v1472_v46 = vadd.f32 %v1471_v45, %v1470_v1 }
 0x1da   : > { %v1392_v62 = vmax.f32 %v1376_v7, 0.0  ;;  %v1397_v14 = vmax.f32 %v1381_v2, 0.0  ;;  %v1485_v26 = vrot.slane %v1484_v25, 4  ;;  %v1459_v22 = vrot.slane %v1458_v34, 2 }
 0x1db   : > { %v1453_v0 = vadd.f32 %v1452_v55, %v1451_v53  ;;  %v1154_v63 = vpop.f32.mrf.mxu1  ;;  %v1564_v24 = vsel %vm1563_vm9, %v1517_v59, %v1562_v38  ;;  %v1473_v9 = vrot.slane %v1472_v46, 2 }
 0x1dc   : > { %v1463_v11 = vsel %vm1399_vm4, %v1392_v62, 0.0  ;;  %v1155_v49 = vadd.f32 %v1154_v63, %v2479_v5  ;;  %v1566_v50 = vsel %vm1565_vm10, %v1518_v37, %v1564_v24  ;;  %v1498_v36 = vsel %vm1399_vm4, %v1397_v14, 0.0 }
 0x1dd   : > { %v1464_v47 = vrot.slane %v1463_v11, 4  ;;  %v1932_v4 = vpop.f32.mrf.mxu1  ;;  %v1454_v8 = vrot.slane %v1453_v0, 1  ;;  %v1486_v30 = vadd.f32 %v1485_v26, %v1484_v25  ;;  %v1499_v3 = vrot.slane %v1498_v36, 4 }
 0x1de   : > { %v1355_v42 = vmul.f32 %v2473_v35, %v1155_v49  ;;  %v1460_v7 = vadd.f32 %v1459_v22, %v1458_v34  ;;  %v1474_v58 = vadd.f32 %v1473_v9, %v1472_v46 }
 0x1df   : > { %v1465_v12 = vadd.f32 %v1464_v47, %v1463_v11  ;;  %v1157_v21 = vpop.f32.mrf.mxu1  ;;  %v1455_v48 = vadd.f32 %v1454_v8, %v1453_v0  ;;  %v1487_v19 = vrot.slane %v1486_v30, 2  ;;  %v1500_v62 = vadd.f32 %v1499_v3, %v1498_v36 }
 0x1e0   : > { %v1378_v5 = vadd.f32 %v2546_v56, %v1355_v42  ;;  %v1461_v32 = vrot.slane %v1460_v7, 1  ;;  %v1475_v6 = vrot.slane %v1474_v58, 1 }
 0x1e1   : > { %v1933_v44 = vpop.f32.mrf.mxu1  ;;  %v1519_v43 = vmul.f32 0.125, %v1455_v48  ;;  %v1466_v39 = vrot.slane %v1465_v12, 2  ;;  %v1488_v18 = vadd.f32 %v1487_v19, %v1486_v30  ;;  %v1501_v47 = vrot.slane %v1500_v62, 2 }
 0x1e2   : > { %v1394_v35 = vmax.f32 %v1378_v5, 0.0  ;;  %v1462_v4 = vadd.f32 %v1461_v32, %v1460_v7  ;;  %v1476_v21 = vadd.f32 %v1475_v6, %v1474_v58 }
 0x1e3   : > { %v1246_v57 = vpop.f32.mrf.mxu1  ;;  %v1568_v16 = vsel %vm1567_vm11, %v1519_v43, %v1566_v50  ;;  %v1467_v53 = vadd.f32 %v1466_v39, %v1465_v12  ;;  %v1489_v48 = vrot.slane %v1488_v18, 1  ;;  %v1502_v24 = vadd.f32 %v1501_v47, %v1500_v62 }
 0x1e4   : > { %v1477_v29 = vsel %vm1399_vm4, %v1394_v35, 0.0  ;;  %v1247_v33 = vadd.f32 %v1246_v57, %v2495_v23  ;;  %1966 = vmatprep.mubr.msk.f32.mxu0 %vm1399_vm4, %v1568_v16  ;;  %v1520_v5 = vmul.f32 0.125, %v1462_v4  ;;  %v1522_v43 = vmul.f32 0.125, %v1476_v21 }
 0x1e5   : > { %v1478_v40 = vrot.slane %v1477_v29, 4  ;;  %v1944_v41 = vpop.f32.mrf.mxu1  ;;  %v1468_v60 = vrot.slane %v1467_v53, 1  ;;  %v1490_v35 = vadd.f32 %v1489_v48, %v1488_v18  ;;  %v1503_v50 = vrot.slane %v1502_v24, 1 }
 0x1e6   : > { %v1357_v51 = vmul.f32 %v2488_v10, %v1247_v33 }
 0x1e7   : > { %v1479_v27 = vadd.f32 %v1478_v40, %v1477_v29  ;;  %v1249_v54 = vpop.f32.mrf.mxu1  ;;  %v1469_v20 = vadd.f32 %v1468_v60, %v1467_v53  ;;  %v1524_v29 = vmul.f32 0.125, %v1490_v35  ;;  %v1504_v33 = vadd.f32 %v1503_v50, %v1502_v24 }
 0x1e8   : > { %v1380_v28 = vadd.f32 %v2546_v56, %v1357_v51  ;;  %v1788_v54 = vld [vmem:[%s2681_s5] ss:$0 sm:$0xff] }
 0x1e9   : > { %v1480_v55 = vrot.slane %v1479_v27, 2  ;;  %v1945_v23 = vpop.f32.mrf.mxu1  ;;  %v1521_v45 = vmul.f32 0.125, %v1469_v20  ;;  %v1526_v51 = vmul.f32 0.125, %v1504_v33 }
 0x1ea   : > { %v1396_v13 = vmax.f32 %v1380_v28, 0.0 }
 0x1eb   : > { %v1481_v52 = vadd.f32 %v1480_v55, %v1479_v27  ;;  %v1338_v61 = vpop.f32.mrf.mxu1  ;;  %v1569_v25 = vsel %vm1555_vm5, %v1521_v45, %v1520_v5 }
 0x1ec   : > { %v1491_v10 = vsel %vm1399_vm4, %v1396_v13, 0.0  ;;  %v1339_v17 = vadd.f32 %v1338_v61, %v2511_v31  ;;  %v1570_v39 = vsel %vm1557_vm6, %v1522_v43, %v1569_v25 }
 0x1ed   : > { %v1492_v0 = vrot.slane %v1491_v10, 4  ;;  %v1956_v63 = vpop.f32.mrf.mxu1  ;;  %v1482_v1 = vrot.slane %v1481_v52, 1 }
 0x1ee   : > { %v1359_v59 = vmul.f32 %v2507_v15, %v1339_v17 }
 0x1ef   : > { %v1493_v11 = vadd.f32 %v1492_v0, %v1491_v10  ;;  %v1341_v49 = vpop.f32.mrf.mxu1  ;;  %v1483_v31 = vadd.f32 %v1482_v1, %v1481_v52 }
 0x1f0   : > { %v1382_v2 = vadd.f32 %v2546_v56, %v1359_v59 }
 0x1f1   : > { %v1494_v8 = vrot.slane %v1493_v11, 2  ;;  %v1957_v42 = vpop.f32.mrf.mxu1  ;;  %v1523_v14 = vmul.f32 0.125, %v1483_v31 }
 0x1f2   : > { %v1398_v38 = vmax.f32 %v1382_v2, 0.0 }
 0x1f3   : > { %v1495_v12 = vadd.f32 %v1494_v8, %v1493_v11  ;;  %v1571_v26 = vsel %vm1559_vm7, %v1523_v14, %v1570_v39 }
 0x1f4   : > { %v1505_v15 = vsel %vm1399_vm4, %v1398_v38, 0.0  ;;  %v1572_v36 = vsel %vm1561_vm8, %v1524_v29, %v1571_v26 }
 0x1f5   : > { %v1496_v37 = vrot.slane %v1495_v12, 1  ;;  %v1506_v34 = vrot.slane %v1505_v15, 4 }
 0x1f7   : > { %v1497_v44 = vadd.f32 %v1496_v37, %v1495_v12  ;;  %v1507_v56 = vadd.f32 %v1506_v34, %v1505_v15 }
 0x1f9   : > { %v1508_v46 = vrot.slane %v1507_v56, 2  ;;  %v1525_v57 = vmul.f32 0.125, %v1497_v44 }
 0x1fb   : > { %v1509_v16 = vadd.f32 %v1508_v46, %v1507_v56  ;;  %v1573_v41 = vsel %vm1563_vm9, %v1525_v57, %v1572_v36 }
 0x1fc   : > { %v1574_v53 = vsel %vm1565_vm10, %v1526_v51, %v1573_v41 }
 0x1fd   : > { %v1510_v22 = vrot.slane %v1509_v16, 1 }
 0x1ff   : > { %v1511_v40 = vadd.f32 %v1510_v22, %v1509_v16 }
 0x201   : > { %v1527_v9 = vmul.f32 0.125, %v1511_v40 }
 0x203   : > { %v1575_v27 = vsel %vm1567_vm11, %v1527_v9, %v1574_v53 }
 0x204   : > { %1967 = vmatmul.mubr.msk.f32.vlgmr.msra.gmra.mxu0 %vm1399_vm4, %v1575_v27 }
 0x2c4   : > { %v1968_v30 = vpop.f32.mrf.mxu0 }
 0x2c5   : > { %v1652_v3 = vadd.f32 %v1968_v30, %v1788_v54 }
 0x2c6   : > { %v1646_v28 = vpop.f32.mrf.mxu0 }
 0x2c7   : > { %1656 = vst [vmem:[%s261_s18 + $0x8] sm:$0xff] %v1652_v3  ;;  %v1647_v7 = vadd.f32 %v1788_v54, %v1646_v28 }
 0x2c9   : > { %1655 = vst [vmem:[%s261_s18] sm:$0xff] %v1647_v7 }
 0x2ca   : > { %2066 = shalt.err (!%p2063_p3)
}
 0x2cb   : > { %s2067_s13 = scalar_lea.hbm %s2634_s29, 256  ;;  %s2071_s16 = scalar_lea.hbm %s2682_s6, 512 }
 0x2cc   : > { %p2068_p4 = scmp.ne.s32.totalorder %s2634_s29, %s2067_s13  ;;  %p2072_p9 = scmp.lt.s32.totalorder %s2634_s29, %s2682_s6 }
 0x2cd   : > { %p2073_p10 = scmp.lt.s32.totalorder %s2071_s16, %s2067_s13 }
 0x2ce   : > { %p2069_p7 = pnand %p2068_p4, %p2193_p5 }
 0x2cf   : > { %p2074_p11 = por %p2073_p10, %p2072_p9 }
 0x2d0   : > { %p2070_p8 = pneg %p2069_p7 }
 0x2d2   : > { %p2075_p12 = pnand %p2074_p11, %p2070_p8 }
 0x2d4   : > { %2078 = shalt.err (!%p2075_p12)
}
 0x2d5   : > { %s2118_s20 = smov 128   ;;  %s2119_s26 = smov 8  }
 0x2d6   : > { %1969 = dma.vmem_to_hbm [thread:$0]  (%p2193_p5), %s2629_s19, 256, %s2634_s29, %s2636_s9, %s2118_s20, %s2118_s20, %s2119_s26  }
 0x2d7 PF: > { %p1975_p13 = scmp.ge.s32.totalorder %s2113_s24, 2  ;;  %s1686_s28 = sand.u32 1, %s2101_s21  }
 0x2d8   : > { %s1687_s10 = scalar_lea.sflag [#allocation3], %s1686_s28 }
 0x2d9   : > { %p1972_p0 = pnand %p1975_p13, %p2197_p6 }
 0x2db   : > { %p1973_p1 = pneg %p1972_p0 }
 0x2dd   : > { %2096 = dma.done.wait (%p1973_p1), %s1687_s10, 256  }
 0x2de   : > { %2098 = vsyncadd (%p1973_p1), %s1687_s10, 4294967040  ;;  %p16_p2 = scmp.ge.s32.totalorder %s2180_s27, 4   ;;  %s2685_s21 = smov %s2105_s22 }
 0x2df   : > { %s2686_s22 = smov %s2109_s23  ;;  %s2687_s23 = smov %s2191_s30 }
 0x2e0   : > { %s2688_s24 = smov %s2180_s27  ;;  %18 = sbr.rel (!%p16_p2) target bundleno = 3 (0x3), region = 82 }
 0x2e5   :  { %1692 = vsyncpa [#allocation3], 1 }
 0x2e6   :  { %1694 = vsyncpa [#allocation3 + $0x1], 1 }

</bundles_post_ra>
